<compile_context>
chip_gen: v5e
topology: v5e:2x2
jax: 0.10.0
libtpu: 0.0.40
codegen_flags: <defaults>
</compile_context>

<pallas_src>
import functools

import jax
import jax.numpy as jnp
from jax.experimental import pallas as pl
from jax.experimental.pallas import tpu as pltpu


def _round_up(n, m):
    return ((n + m - 1) // m) * m


def _reservoir_kernel(x_ref, w_ref, b_ref,
                      spk_out_ref, mem_out_ref, cnt_ref,
                      mem_scr, spk_scr,
                      *, beta, threshold, reset_mechanism, reset_delay,
                      t_real, t_pad, b_real, b_pad):
    bi = pl.program_id(0)                 # batch-block index ("parallel")
    ti = pl.program_id(1)                 # time-chunk index ("arbitrary", sequential)
    t_chunk, b_blk, _ = x_ref.shape

    # (re)initialize persistent state at the start of every batch block's sequence
    @pl.when(ti == 0)
    def _init():
        mem_scr[...] = jnp.zeros_like(mem_scr)
        spk_scr[...] = jnp.zeros_like(spk_scr)
        cnt_ref[...] = jnp.zeros_like(cnt_ref)

    # W / bias loaded once per grid step (constant block index -> fetched once).
    # Note: W is kept double-buffered by the default pipeline; for very large R on
    # v7x a single-buffered spec + bf16 keeps it within the 64 MiB VMEM.
    w = w_ref[...]                         # (R, R), bf16 or f32
    bias = b_ref[...]                      # (1, R), f32

    need_reset = reset_mechanism in ("zero", "subtract")

    # valid-row mask for the fused firing-rate count (excludes batch padding rows)
    if b_pad != b_real:
        rows = jax.lax.broadcasted_iota(jnp.int32, (b_blk, 1), 0) + bi * b_blk
        valid_rows = (rows < b_real).astype(jnp.float32)          # (b_blk, 1)
    else:
        valid_rows = None

    def step_fn(step, carry):
        mem_prev, spk_prev, rowsum = carry

        if need_reset:
            if reset_delay and threshold > 0.0:
                # with reset_delay, heaviside(mem_{t-1} - th) == spk_{t-1} exactly
                reset = spk_prev
            else:
                reset = (mem_prev - threshold > 0).astype(jnp.float32)

        x_t = x_ref[step]                  # (b_blk, 1); broadcast over R implicitly

        # recurrent linear: spk_prev @ W.T + b  (MXU, f32 accumulation)
        rec = jax.lax.dot_general(
            spk_prev.astype(w.dtype), w,
            dimension_numbers=(((1,), (1,)), ((), ())),
            preferred_element_type=jnp.float32) + bias

        base = beta * mem_prev + x_t + rec

        if reset_mechanism == "zero":
            mem = base - reset * base
        elif reset_mechanism == "subtract":
            mem = base - reset * threshold
        else:                              # "none"
            mem = base

        spk = (mem - threshold > 0).astype(jnp.float32)

        if (not reset_delay) and need_reset:
            do_reset = spk - reset
            if reset_mechanism == "zero":
                mem = mem - do_reset * mem
            else:                          # "subtract"
                mem = mem - do_reset * threshold

        spk_out_ref[step] = spk
        mem_out_ref[step] = mem

        # fused firing-rate accumulation: lane-reduce spikes per row (XLU slot)
        s = jnp.sum(spk, axis=1, keepdims=True)                   # (b_blk, 1)
        if t_pad != t_real:
            t_ok = (ti * t_chunk + step < t_real).astype(jnp.float32)
            s = s * t_ok
        return mem, spk, rowsum + s

    mem0 = mem_scr[...]
    spk0 = spk_scr[...]
    row0 = jnp.zeros((b_blk, 1), jnp.float32)
    mem, spk, rowsum = jax.lax.fori_loop(0, t_chunk, step_fn,
                                         (mem0, spk0, row0), unroll=True)

    mem_scr[...] = mem
    spk_scr[...] = spk

    if valid_rows is not None:
        rowsum = rowsum * valid_rows
    cnt_ref[0] = cnt_ref[0] + jnp.sum(rowsum, axis=0, keepdims=True)


def spiking_reservoir_forward(x, W, b, *, beta, threshold,
                              reset_mechanism="zero", reset_delay=True,
                              matmul_dtype=jnp.bfloat16,
                              time_chunk=8, max_batch_block=128):
    """x: (B, T, 1) float32 (same as the PyTorch forward).
    Returns (avg_firing_rate, spike_record (T,B,R), mem_record (T,B,R))."""
    B, T, _ = x.shape
    R = W.shape[0]
    assert W.shape == (R, R)

    # sublane-friendly batch padding / blocking
    b_blk = min(_round_up(B, 8), max_batch_block)
    B_pad = _round_up(B, b_blk)
    nb = B_pad // b_blk

    # time chunking (amortizes per-grid-step overhead; tail is zero-padded)
    t_chunk = int(min(time_chunk, T))
    T_pad = _round_up(T, t_chunk)
    nt = T_pad // t_chunk

    # time-major input (T, B, 1), padded
    x_tm = jnp.transpose(x, (1, 0, 2)).astype(jnp.float32)
    x_tm = jnp.pad(x_tm, ((0, T_pad - T), (0, B_pad - B), (0, 0)))

    w = W.astype(matmul_dtype)             # bf16 matmul operand (spikes are exact 0/1)
    b2 = b.reshape(1, R).astype(jnp.float32)
    beta = float(min(max(float(beta), 0.0), 1.0))   # snntorch beta.clamp(0, 1)

    kernel = functools.partial(
        _reservoir_kernel, beta=beta, threshold=float(threshold),
        reset_mechanism=reset_mechanism, reset_delay=bool(reset_delay),
        t_real=T, t_pad=T_pad, b_real=B, b_pad=B_pad)

    spk_rec, mem_rec, counts = pl.pallas_call(
        kernel,
        out_shape=(jax.ShapeDtypeStruct((T_pad, B_pad, R), jnp.float32),
                   jax.ShapeDtypeStruct((T_pad, B_pad, R), jnp.float32),
                   jax.ShapeDtypeStruct((nb, 1, 1), jnp.float32)),
        grid_spec=pltpu.PrefetchScalarGridSpec(
            num_scalar_prefetch=0,
            grid=(nb, nt),
            in_specs=[pl.BlockSpec((t_chunk, b_blk, 1), lambda i, t: (t, i, 0)),
                      pl.BlockSpec((R, R), lambda i, t: (0, 0)),
                      pl.BlockSpec((1, R), lambda i, t: (0, 0))],
            out_specs=[pl.BlockSpec((t_chunk, b_blk, R), lambda i, t: (t, i, 0)),
                       pl.BlockSpec((t_chunk, b_blk, R), lambda i, t: (t, i, 0)),
                       pl.BlockSpec((1, 1, 1), lambda i, t: (i, 0, 0))],
            scratch_shapes=[pltpu.VMEM((b_blk, R), jnp.float32),   # membrane state
                            pltpu.VMEM((b_blk, R), jnp.float32)],  # spike state
        ),
        compiler_params=pltpu.CompilerParams(
            dimension_semantics=("parallel", "arbitrary"),
            vmem_limit_bytes=64 << 20),
    )(x_tm, w, b2)

    spk_rec = spk_rec[:T, :B]
    mem_rec = mem_rec[:T, :B]
    avg_firing_rate = jnp.sum(counts) / float(T * B * R)
    return avg_firing_rate, spk_rec, mem_rec


def _reference_forward(x, W, b, *, beta, threshold, reset_mechanism="zero",
                       reset_delay=True, matmul_dtype=jnp.float32):
    """Pure-JAX reference mirroring the PyTorch/snntorch loop."""
    B, T, _ = x.shape
    R = W.shape[0]
    beta = min(max(float(beta), 0.0), 1.0)
    Wc = W.astype(matmul_dtype)
    mem = jnp.zeros((B, R), jnp.float32)
    spk = jnp.zeros((B, R), jnp.float32)
    spk_rec, mem_rec = [], []
    for t in range(T):
        reset = (mem - threshold > 0).astype(jnp.float32)
        x_t = x[:, t, :]                                   # (B, 1)
        rec = jax.lax.dot_general(
            spk.astype(matmul_dtype), Wc,
            dimension_numbers=(((1,), (1,)), ((), ())),
            preferred_element_type=jnp.float32) + b[None, :]
        base = beta * mem + x_t + rec
        if reset_mechanism == "zero":
            mem = base - reset * base
        elif reset_mechanism == "subtract":
            mem = base - reset * threshold
        else:
            mem = base
        spk = (mem - threshold > 0).astype(jnp.float32)
        if not reset_delay:
            do_reset = spk - reset
            if reset_mechanism == "zero":
                mem = mem - do_reset * mem
            elif reset_mechanism == "subtract":
                mem = mem - do_reset * threshold
        spk_rec.append(spk)
        mem_rec.append(mem)
    spk_rec = jnp.stack(spk_rec)
    mem_rec = jnp.stack(mem_rec)
    return jnp.mean(spk_rec), spk_rec, mem_rec


if __name__ == "__main__":
    # Small, deterministic synthetic setup (stands in for the .npy connectivity load).
    key = jax.random.PRNGKey(0)
    k_w, k_b, k_x = jax.random.split(key, 3)

    batch_size = 4
    time_steps = 16
    reservoir_size = 128
    threshold = 1.0
    beta_reservoir = 0.9
    reset_mechanism = "zero"
    reset_delay = True

    # Deterministic "loaded" recurrent connectivity matrix and recurrent bias.
    W = jax.random.normal(k_w, (reservoir_size, reservoir_size), jnp.float32) * 0.1
    b = jax.random.uniform(k_b, (reservoir_size,), jnp.float32,
                           minval=-0.05, maxval=0.05)
    # Input signal: (batch, time, 1), positive-ish so neurons actually spike.
    x = jax.random.uniform(k_x, (batch_size, time_steps, 1), jnp.float32,
                           minval=0.0, maxval=2.0)

    # Fast path: bf16 matmul operands, f32 accumulation / state math (default).
    rate_bf, spk_bf, mem_bf = spiking_reservoir_forward(
        x, W, b, beta=beta_reservoir, threshold=threshold,
        reset_mechanism=reset_mechanism, reset_delay=reset_delay,
        matmul_dtype=jnp.bfloat16)
    jax.block_until_ready((rate_bf, spk_bf, mem_bf))

    # Exact-f32 path for semantics validation against the pure-JAX reference.
    rate_f32, spk_f32, mem_f32 = spiking_reservoir_forward(
        x, W, b, beta=beta_reservoir, threshold=threshold,
        reset_mechanism=reset_mechanism, reset_delay=reset_delay,
        matmul_dtype=jnp.float32)
    jax.block_until_ready((rate_f32, spk_f32, mem_f32))

    # References (matched matmul precision for each path).
    ref_rate, ref_spk, ref_mem = _reference_forward(
        x, W, b, beta=beta_reservoir, threshold=threshold,
        reset_mechanism=reset_mechanism, reset_delay=reset_delay,
        matmul_dtype=jnp.float32)
    ref_rate_bf, ref_spk_bf, _ = _reference_forward(
        x, W, b, beta=beta_reservoir, threshold=threshold,
        reset_mechanism=reset_mechanism, reset_delay=reset_delay,
        matmul_dtype=jnp.bfloat16)

    # f32 path: tight check against the f32 reference (module semantics).
    assert spk_f32.shape == (time_steps, batch_size, reservoir_size)
    assert mem_f32.shape == (time_steps, batch_size, reservoir_size)
    assert jnp.allclose(mem_f32, ref_mem, atol=1e-3, rtol=1e-3)
    assert abs(float(rate_f32) - float(ref_rate)) < 1e-3

    # bf16 fast path: loose check against the matched-precision reference.
    assert spk_bf.shape == (time_steps, batch_size, reservoir_size)
    assert float(jnp.mean(jnp.abs(spk_bf - ref_spk_bf))) < 1e-2
    assert abs(float(rate_bf) - float(ref_rate_bf)) < 1e-2

    print("KERNEL_OK")
</pallas_src>

<mosaic_0001>
module attributes {stable_mosaic.version = 11 : i64} {
  func.func @_reservoir_kernel(%arg0: i32, %arg1: i32, %arg2: memref<8x8x1xf32, #tpu.memory_space<vmem>>, %arg3: memref<128x128xbf16, #tpu.memory_space<vmem>>, %arg4: memref<1x128xf32, #tpu.memory_space<vmem>>, %arg5: memref<8x8x128xf32, #tpu.memory_space<vmem>>, %arg6: memref<8x8x128xf32, #tpu.memory_space<vmem>>, %arg7: memref<1x1x1xf32, #tpu.memory_space<vmem>>, %arg8: memref<8x128xf32, #tpu.memory_space<vmem>>, %arg9: memref<8x128xf32, #tpu.memory_space<vmem>>) attributes {dimension_semantics = [#tpu.dimension_semantics<parallel>, #tpu.dimension_semantics<arbitrary>], iteration_bounds = array<i64: 1, 2>, scalar_prefetch = 0 : i64, scratch_operands = 2 : i64, tpu.core_type = #tpu.core_type<tc>, window_params = [{transform_indices = @transform_0, window_bounds = array<i64: 8, 8, 1>}, {pipeline_mode = #tpu.pipeline_mode<synchronous>, transform_indices = @transform_1, window_bounds = array<i64: 128, 128>}, {pipeline_mode = #tpu.pipeline_mode<synchronous>, transform_indices = @transform_2, window_bounds = array<i64: 1, 128>}, {transform_indices = @transform_3, window_bounds = array<i64: 8, 8, 128>}, {transform_indices = @transform_4, window_bounds = array<i64: 8, 8, 128>}, {transform_indices = @transform_5, window_bounds = array<i64: 1, 1, 1>}]} {
    %c0_i32 = arith.constant 0 : i32
    %0 = arith.cmpi eq, %arg1, %c0_i32 : i32
    %1 = arith.extui %0 : i1 to i32
    %c0_i32_0 = arith.constant 0 : i32
    %2 = arith.cmpi ne, %1, %c0_i32_0 : i32
    scf.if %2 {
      %cst_110 = arith.constant 0.000000e+00 : f32
      %275 = vector.broadcast %cst_110 : f32 to vector<8x128xf32>
      %c0_111 = arith.constant 0 : index
      %c0_112 = arith.constant 0 : index
      %276 = vector.load %arg8[%c0_111, %c0_112] : memref<8x128xf32, #tpu.memory_space<vmem>>, vector<8x128xf32>
      tpu.vector_store %arg8[%c0_111, %c0_112], %275 {strides = array<i32>} : memref<8x128xf32, #tpu.memory_space<vmem>>, vector<8x128xf32>,
      %cst_113 = arith.constant 0.000000e+00 : f32
      %277 = vector.broadcast %cst_113 : f32 to vector<8x128xf32>
      %c0_114 = arith.constant 0 : index
      %c0_115 = arith.constant 0 : index
      %278 = vector.load %arg9[%c0_114, %c0_115] : memref<8x128xf32, #tpu.memory_space<vmem>>, vector<8x128xf32>
      tpu.vector_store %arg9[%c0_114, %c0_115], %277 {strides = array<i32>} : memref<8x128xf32, #tpu.memory_space<vmem>>, vector<8x128xf32>,
      %cst_116 = arith.constant 0.000000e+00 : f32
      %279 = vector.broadcast %cst_116 : f32 to vector<1x1x1xf32>
      %c0_117 = arith.constant 0 : index
      %c0_118 = arith.constant 0 : index
      %c0_119 = arith.constant 0 : index
      %280 = vector.load %arg7[%c0_117, %c0_118, %c0_119] : memref<1x1x1xf32, #tpu.memory_space<vmem>>, vector<1x1x1xf32>
      tpu.vector_store %arg7[%c0_117, %c0_118, %c0_119], %279 {strides = array<i32>} : memref<1x1x1xf32, #tpu.memory_space<vmem>>, vector<1x1x1xf32>,
    } else {
    }
    %c0 = arith.constant 0 : index
    %c0_1 = arith.constant 0 : index
    %3 = vector.load %arg3[%c0, %c0_1] : memref<128x128xbf16, #tpu.memory_space<vmem>>, vector<128x128xbf16>
    %c0_2 = arith.constant 0 : index
    %c0_3 = arith.constant 0 : index
    %4 = vector.load %arg4[%c0_2, %c0_3] : memref<1x128xf32, #tpu.memory_space<vmem>>, vector<1x128xf32>
    %5 = tpu.iota {dimensions = array<i32: 0>} : vector<8x1xi32>
    %c8_i32 = arith.constant 8 : i32
    %6 = arith.muli %arg0, %c8_i32 : i32
    %7 = vector.broadcast %6 : i32 to vector<8x1xi32>
    %8 = arith.addi %5, %7 : vector<8x1xi32>
    %c4_i32 = arith.constant 4 : i32
    %9 = vector.broadcast %c4_i32 : i32 to vector<8x1xi32>
    %10 = arith.cmpi slt, %8, %9 : vector<8x1xi32>
    %11 = arith.extui %10 : vector<8x1xi1> to vector<8x1xi32>
    %12 = arith.sitofp %11 : vector<8x1xi32> to vector<8x1xf32>
    %c0_4 = arith.constant 0 : index
    %c0_5 = arith.constant 0 : index
    %13 = vector.load %arg8[%c0_4, %c0_5] : memref<8x128xf32, #tpu.memory_space<vmem>>, vector<8x128xf32>
    %c0_6 = arith.constant 0 : index
    %c0_7 = arith.constant 0 : index
    %14 = vector.load %arg9[%c0_6, %c0_7] : memref<8x128xf32, #tpu.memory_space<vmem>>, vector<8x128xf32>
    %cst = arith.constant 0.000000e+00 : f32
    %15 = vector.broadcast %cst : f32 to vector<8x1xf32>
    %c0_i32_8 = arith.constant 0 : i32
    %16 = arith.index_cast %c0_i32_8 : i32 to index
    %c0_9 = arith.constant 0 : index
    %c0_10 = arith.constant 0 : index
    %17 = vector.load %arg2[%16, %c0_9, %c0_10] : memref<8x8x1xf32, #tpu.memory_space<vmem>>, vector<1x8x1xf32>
    %18 = vector.shape_cast %17 : vector<1x8x1xf32> to vector<8x1xf32>
    %19 = arith.truncf %14 : vector<8x128xf32> to vector<8x128xbf16>
    %cst_11 = arith.constant dense<0.000000e+00> : vector<8x128xf32>
    %20 = tpu.matmul %19, %3, %cst_11 {dimension_numbers = #tpu.dot_dimension_numbers<[1], [1], [0], [0], [0, 0, 1, 0], [], []>} : vector<8x128xbf16>, vector<128x128xbf16>, vector<8x128xf32> -> vector<8x128xf32>
    %21 = vector.broadcast %4 : vector<1x128xf32> to vector<8x128xf32>
    %22 = arith.addf %20, %21 : vector<8x128xf32>
    %cst_12 = arith.constant 0.899999976 : f32
    %23 = vector.broadcast %cst_12 : f32 to vector<8x128xf32>
    %24 = arith.mulf %23, %13 : vector<8x128xf32>
    %25 = vector.broadcast %18 : vector<8x1xf32> to vector<8x128xf32>
    %26 = arith.addf %24, %25 : vector<8x128xf32>
    %27 = arith.addf %26, %22 : vector<8x128xf32>
    %28 = arith.mulf %14, %27 : vector<8x128xf32>
    %29 = arith.subf %27, %28 : vector<8x128xf32>
    %cst_13 = arith.constant 1.000000e+00 : f32
    %30 = vector.broadcast %cst_13 : f32 to vector<8x128xf32>
    %31 = arith.subf %29, %30 : vector<8x128xf32>
    %cst_14 = arith.constant 0.000000e+00 : f32
    %32 = vector.broadcast %cst_14 : f32 to vector<8x128xf32>
    %33 = arith.cmpf ogt, %31, %32 : vector<8x128xf32>
    %34 = arith.extui %33 : vector<8x128xi1> to vector<8x128xi32>
    %35 = arith.sitofp %34 : vector<8x128xi32> to vector<8x128xf32>
    %36 = arith.index_cast %c0_i32_8 : i32 to index
    %c0_15 = arith.constant 0 : index
    %c0_16 = arith.constant 0 : index
    %37 = vector.load %arg5[%36, %c0_15, %c0_16] : memref<8x8x128xf32, #tpu.memory_space<vmem>>, vector<1x8x128xf32>
    %38 = vector.shape_cast %37 : vector<1x8x128xf32> to vector<8x128xf32>
    %39 = vector.shape_cast %35 : vector<8x128xf32> to vector<1x8x128xf32>
    tpu.vector_store %arg5[%36, %c0_15, %c0_16], %39 {strides = array<i32>} : memref<8x8x128xf32, #tpu.memory_space<vmem>>, vector<1x8x128xf32>,
    %40 = arith.index_cast %c0_i32_8 : i32 to index
    %c0_17 = arith.constant 0 : index
    %c0_18 = arith.constant 0 : index
    %41 = vector.load %arg6[%40, %c0_17, %c0_18] : memref<8x8x128xf32, #tpu.memory_space<vmem>>, vector<1x8x128xf32>
    %42 = vector.shape_cast %41 : vector<1x8x128xf32> to vector<8x128xf32>
    %43 = vector.shape_cast %29 : vector<8x128xf32> to vector<1x8x128xf32>
    tpu.vector_store %arg6[%40, %c0_17, %c0_18], %43 {strides = array<i32>} : memref<8x8x128xf32, #tpu.memory_space<vmem>>, vector<1x8x128xf32>,
    %cst_19 = arith.constant dense<0.000000e+00> : vector<8xf32>
    %44 = vector.multi_reduction <add>, %35, %cst_19 [1] : vector<8x128xf32> to vector<8xf32>
    %45 = vector.shape_cast %44 : vector<8xf32> to vector<8x1xf32>
    %46 = arith.addf %15, %45 : vector<8x1xf32>
    %c1_i32 = arith.constant 1 : i32
    %47 = arith.index_cast %c1_i32 : i32 to index
    %c0_20 = arith.constant 0 : index
    %c0_21 = arith.constant 0 : index
    %48 = vector.load %arg2[%47, %c0_20, %c0_21] : memref<8x8x1xf32, #tpu.memory_space<vmem>>, vector<1x8x1xf32>
    %49 = vector.shape_cast %48 : vector<1x8x1xf32> to vector<8x1xf32>
    %50 = arith.truncf %35 : vector<8x128xf32> to vector<8x128xbf16>
    %cst_22 = arith.constant dense<0.000000e+00> : vector<8x128xf32>
    %51 = tpu.matmul %50, %3, %cst_22 {dimension_numbers = #tpu.dot_dimension_numbers<[1], [1], [0], [0], [0, 0, 1, 0], [], []>} : vector<8x128xbf16>, vector<128x128xbf16>, vector<8x128xf32> -> vector<8x128xf32>
    %52 = vector.broadcast %4 : vector<1x128xf32> to vector<8x128xf32>
    %53 = arith.addf %51, %52 : vector<8x128xf32>
    %cst_23 = arith.constant 0.899999976 : f32
    %54 = vector.broadcast %cst_23 : f32 to vector<8x128xf32>
    %55 = arith.mulf %54, %29 : vector<8x128xf32>
    %56 = vector.broadcast %49 : vector<8x1xf32> to vector<8x128xf32>
    %57 = arith.addf %55, %56 : vector<8x128xf32>
    %58 = arith.addf %57, %53 : vector<8x128xf32>
    %59 = arith.mulf %35, %58 : vector<8x128xf32>
    %60 = arith.subf %58, %59 : vector<8x128xf32>
    %cst_24 = arith.constant 1.000000e+00 : f32
    %61 = vector.broadcast %cst_24 : f32 to vector<8x128xf32>
    %62 = arith.subf %60, %61 : vector<8x128xf32>
    %cst_25 = arith.constant 0.000000e+00 : f32
    %63 = vector.broadcast %cst_25 : f32 to vector<8x128xf32>
    %64 = arith.cmpf ogt, %62, %63 : vector<8x128xf32>
    %65 = arith.extui %64 : vector<8x128xi1> to vector<8x128xi32>
    %66 = arith.sitofp %65 : vector<8x128xi32> to vector<8x128xf32>
    %67 = arith.index_cast %c1_i32 : i32 to index
    %c0_26 = arith.constant 0 : index
    %c0_27 = arith.constant 0 : index
    %68 = vector.load %arg5[%67, %c0_26, %c0_27] : memref<8x8x128xf32, #tpu.memory_space<vmem>>, vector<1x8x128xf32>
    %69 = vector.shape_cast %68 : vector<1x8x128xf32> to vector<8x128xf32>
    %70 = vector.shape_cast %66 : vector<8x128xf32> to vector<1x8x128xf32>
    tpu.vector_store %arg5[%67, %c0_26, %c0_27], %70 {strides = array<i32>} : memref<8x8x128xf32, #tpu.memory_space<vmem>>, vector<1x8x128xf32>,
    %71 = arith.index_cast %c1_i32 : i32 to index
    %c0_28 = arith.constant 0 : index
    %c0_29 = arith.constant 0 : index
    %72 = vector.load %arg6[%71, %c0_28, %c0_29] : memref<8x8x128xf32, #tpu.memory_space<vmem>>, vector<1x8x128xf32>
    %73 = vector.shape_cast %72 : vector<1x8x128xf32> to vector<8x128xf32>
    %74 = vector.shape_cast %60 : vector<8x128xf32> to vector<1x8x128xf32>
    tpu.vector_store %arg6[%71, %c0_28, %c0_29], %74 {strides = array<i32>} : memref<8x8x128xf32, #tpu.memory_space<vmem>>, vector<1x8x128xf32>,
    %cst_30 = arith.constant dense<0.000000e+00> : vector<8xf32>
    %75 = vector.multi_reduction <add>, %66, %cst_30 [1] : vector<8x128xf32> to vector<8xf32>
    %76 = vector.shape_cast %75 : vector<8xf32> to vector<8x1xf32>
    %77 = arith.addf %46, %76 : vector<8x1xf32>
    %c2_i32 = arith.constant 2 : i32
    %78 = arith.index_cast %c2_i32 : i32 to index
    %c0_31 = arith.constant 0 : index
    %c0_32 = arith.constant 0 : index
    %79 = vector.load %arg2[%78, %c0_31, %c0_32] : memref<8x8x1xf32, #tpu.memory_space<vmem>>, vector<1x8x1xf32>
    %80 = vector.shape_cast %79 : vector<1x8x1xf32> to vector<8x1xf32>
    %81 = arith.truncf %66 : vector<8x128xf32> to vector<8x128xbf16>
    %cst_33 = arith.constant dense<0.000000e+00> : vector<8x128xf32>
    %82 = tpu.matmul %81, %3, %cst_33 {dimension_numbers = #tpu.dot_dimension_numbers<[1], [1], [0], [0], [0, 0, 1, 0], [], []>} : vector<8x128xbf16>, vector<128x128xbf16>, vector<8x128xf32> -> vector<8x128xf32>
    %83 = vector.broadcast %4 : vector<1x128xf32> to vector<8x128xf32>
    %84 = arith.addf %82, %83 : vector<8x128xf32>
    %cst_34 = arith.constant 0.899999976 : f32
    %85 = vector.broadcast %cst_34 : f32 to vector<8x128xf32>
    %86 = arith.mulf %85, %60 : vector<8x128xf32>
    %87 = vector.broadcast %80 : vector<8x1xf32> to vector<8x128xf32>
    %88 = arith.addf %86, %87 : vector<8x128xf32>
    %89 = arith.addf %88, %84 : vector<8x128xf32>
    %90 = arith.mulf %66, %89 : vector<8x128xf32>
    %91 = arith.subf %89, %90 : vector<8x128xf32>
    %cst_35 = arith.constant 1.000000e+00 : f32
    %92 = vector.broadcast %cst_35 : f32 to vector<8x128xf32>
    %93 = arith.subf %91, %92 : vector<8x128xf32>
    %cst_36 = arith.constant 0.000000e+00 : f32
    %94 = vector.broadcast %cst_36 : f32 to vector<8x128xf32>
    %95 = arith.cmpf ogt, %93, %94 : vector<8x128xf32>
    %96 = arith.extui %95 : vector<8x128xi1> to vector<8x128xi32>
    %97 = arith.sitofp %96 : vector<8x128xi32> to vector<8x128xf32>
    %98 = arith.index_cast %c2_i32 : i32 to index
    %c0_37 = arith.constant 0 : index
    %c0_38 = arith.constant 0 : index
    %99 = vector.load %arg5[%98, %c0_37, %c0_38] : memref<8x8x128xf32, #tpu.memory_space<vmem>>, vector<1x8x128xf32>
    %100 = vector.shape_cast %99 : vector<1x8x128xf32> to vector<8x128xf32>
    %101 = vector.shape_cast %97 : vector<8x128xf32> to vector<1x8x128xf32>
    tpu.vector_store %arg5[%98, %c0_37, %c0_38], %101 {strides = array<i32>} : memref<8x8x128xf32, #tpu.memory_space<vmem>>, vector<1x8x128xf32>,
    %102 = arith.index_cast %c2_i32 : i32 to index
    %c0_39 = arith.constant 0 : index
    %c0_40 = arith.constant 0 : index
    %103 = vector.load %arg6[%102, %c0_39, %c0_40] : memref<8x8x128xf32, #tpu.memory_space<vmem>>, vector<1x8x128xf32>
    %104 = vector.shape_cast %103 : vector<1x8x128xf32> to vector<8x128xf32>
    %105 = vector.shape_cast %91 : vector<8x128xf32> to vector<1x8x128xf32>
    tpu.vector_store %arg6[%102, %c0_39, %c0_40], %105 {strides = array<i32>} : memref<8x8x128xf32, #tpu.memory_space<vmem>>, vector<1x8x128xf32>,
    %cst_41 = arith.constant dense<0.000000e+00> : vector<8xf32>
    %106 = vector.multi_reduction <add>, %97, %cst_41 [1] : vector<8x128xf32> to vector<8xf32>
    %107 = vector.shape_cast %106 : vector<8xf32> to vector<8x1xf32>
    %108 = arith.addf %77, %107 : vector<8x1xf32>
    %c3_i32 = arith.constant 3 : i32
    %109 = arith.index_cast %c3_i32 : i32 to index
    %c0_42 = arith.constant 0 : index
    %c0_43 = arith.constant 0 : index
    %110 = vector.load %arg2[%109, %c0_42, %c0_43] : memref<8x8x1xf32, #tpu.memory_space<vmem>>, vector<1x8x1xf32>
    %111 = vector.shape_cast %110 : vector<1x8x1xf32> to vector<8x1xf32>
    %112 = arith.truncf %97 : vector<8x128xf32> to vector<8x128xbf16>
    %cst_44 = arith.constant dense<0.000000e+00> : vector<8x128xf32>
    %113 = tpu.matmul %112, %3, %cst_44 {dimension_numbers = #tpu.dot_dimension_numbers<[1], [1], [0], [0], [0, 0, 1, 0], [], []>} : vector<8x128xbf16>, vector<128x128xbf16>, vector<8x128xf32> -> vector<8x128xf32>
    %114 = vector.broadcast %4 : vector<1x128xf32> to vector<8x128xf32>
    %115 = arith.addf %113, %114 : vector<8x128xf32>
    %cst_45 = arith.constant 0.899999976 : f32
    %116 = vector.broadcast %cst_45 : f32 to vector<8x128xf32>
    %117 = arith.mulf %116, %91 : vector<8x128xf32>
    %118 = vector.broadcast %111 : vector<8x1xf32> to vector<8x128xf32>
    %119 = arith.addf %117, %118 : vector<8x128xf32>
    %120 = arith.addf %119, %115 : vector<8x128xf32>
    %121 = arith.mulf %97, %120 : vector<8x128xf32>
    %122 = arith.subf %120, %121 : vector<8x128xf32>
    %cst_46 = arith.constant 1.000000e+00 : f32
    %123 = vector.broadcast %cst_46 : f32 to vector<8x128xf32>
    %124 = arith.subf %122, %123 : vector<8x128xf32>
    %cst_47 = arith.constant 0.000000e+00 : f32
    %125 = vector.broadcast %cst_47 : f32 to vector<8x128xf32>
    %126 = arith.cmpf ogt, %124, %125 : vector<8x128xf32>
    %127 = arith.extui %126 : vector<8x128xi1> to vector<8x128xi32>
    %128 = arith.sitofp %127 : vector<8x128xi32> to vector<8x128xf32>
    %129 = arith.index_cast %c3_i32 : i32 to index
    %c0_48 = arith.constant 0 : index
    %c0_49 = arith.constant 0 : index
    %130 = vector.load %arg5[%129, %c0_48, %c0_49] : memref<8x8x128xf32, #tpu.memory_space<vmem>>, vector<1x8x128xf32>
    %131 = vector.shape_cast %130 : vector<1x8x128xf32> to vector<8x128xf32>
    %132 = vector.shape_cast %128 : vector<8x128xf32> to vector<1x8x128xf32>
    tpu.vector_store %arg5[%129, %c0_48, %c0_49], %132 {strides = array<i32>} : memref<8x8x128xf32, #tpu.memory_space<vmem>>, vector<1x8x128xf32>,
    %133 = arith.index_cast %c3_i32 : i32 to index
    %c0_50 = arith.constant 0 : index
    %c0_51 = arith.constant 0 : index
    %134 = vector.load %arg6[%133, %c0_50, %c0_51] : memref<8x8x128xf32, #tpu.memory_space<vmem>>, vector<1x8x128xf32>
    %135 = vector.shape_cast %134 : vector<1x8x128xf32> to vector<8x128xf32>
    %136 = vector.shape_cast %122 : vector<8x128xf32> to vector<1x8x128xf32>
    tpu.vector_store %arg6[%133, %c0_50, %c0_51], %136 {strides = array<i32>} : memref<8x8x128xf32, #tpu.memory_space<vmem>>, vector<1x8x128xf32>,
    %cst_52 = arith.constant dense<0.000000e+00> : vector<8xf32>
    %137 = vector.multi_reduction <add>, %128, %cst_52 [1] : vector<8x128xf32> to vector<8xf32>
    %138 = vector.shape_cast %137 : vector<8xf32> to vector<8x1xf32>
    %139 = arith.addf %108, %138 : vector<8x1xf32>
    %c4_i32_53 = arith.constant 4 : i32
    %140 = arith.index_cast %c4_i32_53 : i32 to index
    %c0_54 = arith.constant 0 : index
    %c0_55 = arith.constant 0 : index
    %141 = vector.load %arg2[%140, %c0_54, %c0_55] : memref<8x8x1xf32, #tpu.memory_space<vmem>>, vector<1x8x1xf32>
    %142 = vector.shape_cast %141 : vector<1x8x1xf32> to vector<8x1xf32>
    %143 = arith.truncf %128 : vector<8x128xf32> to vector<8x128xbf16>
    %cst_56 = arith.constant dense<0.000000e+00> : vector<8x128xf32>
    %144 = tpu.matmul %143, %3, %cst_56 {dimension_numbers = #tpu.dot_dimension_numbers<[1], [1], [0], [0], [0, 0, 1, 0], [], []>} : vector<8x128xbf16>, vector<128x128xbf16>, vector<8x128xf32> -> vector<8x128xf32>
    %145 = vector.broadcast %4 : vector<1x128xf32> to vector<8x128xf32>
    %146 = arith.addf %144, %145 : vector<8x128xf32>
    %cst_57 = arith.constant 0.899999976 : f32
    %147 = vector.broadcast %cst_57 : f32 to vector<8x128xf32>
    %148 = arith.mulf %147, %122 : vector<8x128xf32>
    %149 = vector.broadcast %142 : vector<8x1xf32> to vector<8x128xf32>
    %150 = arith.addf %148, %149 : vector<8x128xf32>
    %151 = arith.addf %150, %146 : vector<8x128xf32>
    %152 = arith.mulf %128, %151 : vector<8x128xf32>
    %153 = arith.subf %151, %152 : vector<8x128xf32>
    %cst_58 = arith.constant 1.000000e+00 : f32
    %154 = vector.broadcast %cst_58 : f32 to vector<8x128xf32>
    %155 = arith.subf %153, %154 : vector<8x128xf32>
    %cst_59 = arith.constant 0.000000e+00 : f32
    %156 = vector.broadcast %cst_59 : f32 to vector<8x128xf32>
    %157 = arith.cmpf ogt, %155, %156 : vector<8x128xf32>
    %158 = arith.extui %157 : vector<8x128xi1> to vector<8x128xi32>
    %159 = arith.sitofp %158 : vector<8x128xi32> to vector<8x128xf32>
    %160 = arith.index_cast %c4_i32_53 : i32 to index
    %c0_60 = arith.constant 0 : index
    %c0_61 = arith.constant 0 : index
    %161 = vector.load %arg5[%160, %c0_60, %c0_61] : memref<8x8x128xf32, #tpu.memory_space<vmem>>, vector<1x8x128xf32>
    %162 = vector.shape_cast %161 : vector<1x8x128xf32> to vector<8x128xf32>
    %163 = vector.shape_cast %159 : vector<8x128xf32> to vector<1x8x128xf32>
    tpu.vector_store %arg5[%160, %c0_60, %c0_61], %163 {strides = array<i32>} : memref<8x8x128xf32, #tpu.memory_space<vmem>>, vector<1x8x128xf32>,
    %164 = arith.index_cast %c4_i32_53 : i32 to index
    %c0_62 = arith.constant 0 : index
    %c0_63 = arith.constant 0 : index
    %165 = vector.load %arg6[%164, %c0_62, %c0_63] : memref<8x8x128xf32, #tpu.memory_space<vmem>>, vector<1x8x128xf32>
    %166 = vector.shape_cast %165 : vector<1x8x128xf32> to vector<8x128xf32>
    %167 = vector.shape_cast %153 : vector<8x128xf32> to vector<1x8x128xf32>
    tpu.vector_store %arg6[%164, %c0_62, %c0_63], %167 {strides = array<i32>} : memref<8x8x128xf32, #tpu.memory_space<vmem>>, vector<1x8x128xf32>,
    %cst_64 = arith.constant dense<0.000000e+00> : vector<8xf32>
    %168 = vector.multi_reduction <add>, %159, %cst_64 [1] : vector<8x128xf32> to vector<8xf32>
    %169 = vector.shape_cast %168 : vector<8xf32> to vector<8x1xf32>
    %170 = arith.addf %139, %169 : vector<8x1xf32>
    %c5_i32 = arith.constant 5 : i32
    %171 = arith.index_cast %c5_i32 : i32 to index
    %c0_65 = arith.constant 0 : index
    %c0_66 = arith.constant 0 : index
    %172 = vector.load %arg2[%171, %c0_65, %c0_66] : memref<8x8x1xf32, #tpu.memory_space<vmem>>, vector<1x8x1xf32>
    %173 = vector.shape_cast %172 : vector<1x8x1xf32> to vector<8x1xf32>
    %174 = arith.truncf %159 : vector<8x128xf32> to vector<8x128xbf16>
    %cst_67 = arith.constant dense<0.000000e+00> : vector<8x128xf32>
    %175 = tpu.matmul %174, %3, %cst_67 {dimension_numbers = #tpu.dot_dimension_numbers<[1], [1], [0], [0], [0, 0, 1, 0], [], []>} : vector<8x128xbf16>, vector<128x128xbf16>, vector<8x128xf32> -> vector<8x128xf32>
    %176 = vector.broadcast %4 : vector<1x128xf32> to vector<8x128xf32>
    %177 = arith.addf %175, %176 : vector<8x128xf32>
    %cst_68 = arith.constant 0.899999976 : f32
    %178 = vector.broadcast %cst_68 : f32 to vector<8x128xf32>
    %179 = arith.mulf %178, %153 : vector<8x128xf32>
    %180 = vector.broadcast %173 : vector<8x1xf32> to vector<8x128xf32>
    %181 = arith.addf %179, %180 : vector<8x128xf32>
    %182 = arith.addf %181, %177 : vector<8x128xf32>
    %183 = arith.mulf %159, %182 : vector<8x128xf32>
    %184 = arith.subf %182, %183 : vector<8x128xf32>
    %cst_69 = arith.constant 1.000000e+00 : f32
    %185 = vector.broadcast %cst_69 : f32 to vector<8x128xf32>
    %186 = arith.subf %184, %185 : vector<8x128xf32>
    %cst_70 = arith.constant 0.000000e+00 : f32
    %187 = vector.broadcast %cst_70 : f32 to vector<8x128xf32>
    %188 = arith.cmpf ogt, %186, %187 : vector<8x128xf32>
    %189 = arith.extui %188 : vector<8x128xi1> to vector<8x128xi32>
    %190 = arith.sitofp %189 : vector<8x128xi32> to vector<8x128xf32>
    %191 = arith.index_cast %c5_i32 : i32 to index
    %c0_71 = arith.constant 0 : index
    %c0_72 = arith.constant 0 : index
    %192 = vector.load %arg5[%191, %c0_71, %c0_72] : memref<8x8x128xf32, #tpu.memory_space<vmem>>, vector<1x8x128xf32>
    %193 = vector.shape_cast %192 : vector<1x8x128xf32> to vector<8x128xf32>
    %194 = vector.shape_cast %190 : vector<8x128xf32> to vector<1x8x128xf32>
    tpu.vector_store %arg5[%191, %c0_71, %c0_72], %194 {strides = array<i32>} : memref<8x8x128xf32, #tpu.memory_space<vmem>>, vector<1x8x128xf32>,
    %195 = arith.index_cast %c5_i32 : i32 to index
    %c0_73 = arith.constant 0 : index
    %c0_74 = arith.constant 0 : index
    %196 = vector.load %arg6[%195, %c0_73, %c0_74] : memref<8x8x128xf32, #tpu.memory_space<vmem>>, vector<1x8x128xf32>
    %197 = vector.shape_cast %196 : vector<1x8x128xf32> to vector<8x128xf32>
    %198 = vector.shape_cast %184 : vector<8x128xf32> to vector<1x8x128xf32>
    tpu.vector_store %arg6[%195, %c0_73, %c0_74], %198 {strides = array<i32>} : memref<8x8x128xf32, #tpu.memory_space<vmem>>, vector<1x8x128xf32>,
    %cst_75 = arith.constant dense<0.000000e+00> : vector<8xf32>
    %199 = vector.multi_reduction <add>, %190, %cst_75 [1] : vector<8x128xf32> to vector<8xf32>
    %200 = vector.shape_cast %199 : vector<8xf32> to vector<8x1xf32>
    %201 = arith.addf %170, %200 : vector<8x1xf32>
    %c6_i32 = arith.constant 6 : i32
    %202 = arith.index_cast %c6_i32 : i32 to index
    %c0_76 = arith.constant 0 : index
    %c0_77 = arith.constant 0 : index
    %203 = vector.load %arg2[%202, %c0_76, %c0_77] : memref<8x8x1xf32, #tpu.memory_space<vmem>>, vector<1x8x1xf32>
    %204 = vector.shape_cast %203 : vector<1x8x1xf32> to vector<8x1xf32>
    %205 = arith.truncf %190 : vector<8x128xf32> to vector<8x128xbf16>
    %cst_78 = arith.constant dense<0.000000e+00> : vector<8x128xf32>
    %206 = tpu.matmul %205, %3, %cst_78 {dimension_numbers = #tpu.dot_dimension_numbers<[1], [1], [0], [0], [0, 0, 1, 0], [], []>} : vector<8x128xbf16>, vector<128x128xbf16>, vector<8x128xf32> -> vector<8x128xf32>
    %207 = vector.broadcast %4 : vector<1x128xf32> to vector<8x128xf32>
    %208 = arith.addf %206, %207 : vector<8x128xf32>
    %cst_79 = arith.constant 0.899999976 : f32
    %209 = vector.broadcast %cst_79 : f32 to vector<8x128xf32>
    %210 = arith.mulf %209, %184 : vector<8x128xf32>
    %211 = vector.broadcast %204 : vector<8x1xf32> to vector<8x128xf32>
    %212 = arith.addf %210, %211 : vector<8x128xf32>
    %213 = arith.addf %212, %208 : vector<8x128xf32>
    %214 = arith.mulf %190, %213 : vector<8x128xf32>
    %215 = arith.subf %213, %214 : vector<8x128xf32>
    %cst_80 = arith.constant 1.000000e+00 : f32
    %216 = vector.broadcast %cst_80 : f32 to vector<8x128xf32>
    %217 = arith.subf %215, %216 : vector<8x128xf32>
    %cst_81 = arith.constant 0.000000e+00 : f32
    %218 = vector.broadcast %cst_81 : f32 to vector<8x128xf32>
    %219 = arith.cmpf ogt, %217, %218 : vector<8x128xf32>
    %220 = arith.extui %219 : vector<8x128xi1> to vector<8x128xi32>
    %221 = arith.sitofp %220 : vector<8x128xi32> to vector<8x128xf32>
    %222 = arith.index_cast %c6_i32 : i32 to index
    %c0_82 = arith.constant 0 : index
    %c0_83 = arith.constant 0 : index
    %223 = vector.load %arg5[%222, %c0_82, %c0_83] : memref<8x8x128xf32, #tpu.memory_space<vmem>>, vector<1x8x128xf32>
    %224 = vector.shape_cast %223 : vector<1x8x128xf32> to vector<8x128xf32>
    %225 = vector.shape_cast %221 : vector<8x128xf32> to vector<1x8x128xf32>
    tpu.vector_store %arg5[%222, %c0_82, %c0_83], %225 {strides = array<i32>} : memref<8x8x128xf32, #tpu.memory_space<vmem>>, vector<1x8x128xf32>,
    %226 = arith.index_cast %c6_i32 : i32 to index
    %c0_84 = arith.constant 0 : index
    %c0_85 = arith.constant 0 : index
    %227 = vector.load %arg6[%226, %c0_84, %c0_85] : memref<8x8x128xf32, #tpu.memory_space<vmem>>, vector<1x8x128xf32>
    %228 = vector.shape_cast %227 : vector<1x8x128xf32> to vector<8x128xf32>
    %229 = vector.shape_cast %215 : vector<8x128xf32> to vector<1x8x128xf32>
    tpu.vector_store %arg6[%226, %c0_84, %c0_85], %229 {strides = array<i32>} : memref<8x8x128xf32, #tpu.memory_space<vmem>>, vector<1x8x128xf32>,
    %cst_86 = arith.constant dense<0.000000e+00> : vector<8xf32>
    %230 = vector.multi_reduction <add>, %221, %cst_86 [1] : vector<8x128xf32> to vector<8xf32>
    %231 = vector.shape_cast %230 : vector<8xf32> to vector<8x1xf32>
    %232 = arith.addf %201, %231 : vector<8x1xf32>
    %c7_i32 = arith.constant 7 : i32
    %233 = arith.index_cast %c7_i32 : i32 to index
    %c0_87 = arith.constant 0 : index
    %c0_88 = arith.constant 0 : index
    %234 = vector.load %arg2[%233, %c0_87, %c0_88] : memref<8x8x1xf32, #tpu.memory_space<vmem>>, vector<1x8x1xf32>
    %235 = vector.shape_cast %234 : vector<1x8x1xf32> to vector<8x1xf32>
    %236 = arith.truncf %221 : vector<8x128xf32> to vector<8x128xbf16>
    %cst_89 = arith.constant dense<0.000000e+00> : vector<8x128xf32>
    %237 = tpu.matmul %236, %3, %cst_89 {dimension_numbers = #tpu.dot_dimension_numbers<[1], [1], [0], [0], [0, 0, 1, 0], [], []>} : vector<8x128xbf16>, vector<128x128xbf16>, vector<8x128xf32> -> vector<8x128xf32>
    %238 = vector.broadcast %4 : vector<1x128xf32> to vector<8x128xf32>
    %239 = arith.addf %237, %238 : vector<8x128xf32>
    %cst_90 = arith.constant 0.899999976 : f32
    %240 = vector.broadcast %cst_90 : f32 to vector<8x128xf32>
    %241 = arith.mulf %240, %215 : vector<8x128xf32>
    %242 = vector.broadcast %235 : vector<8x1xf32> to vector<8x128xf32>
    %243 = arith.addf %241, %242 : vector<8x128xf32>
    %244 = arith.addf %243, %239 : vector<8x128xf32>
    %245 = arith.mulf %221, %244 : vector<8x128xf32>
    %246 = arith.subf %244, %245 : vector<8x128xf32>
    %cst_91 = arith.constant 1.000000e+00 : f32
    %247 = vector.broadcast %cst_91 : f32 to vector<8x128xf32>
    %248 = arith.subf %246, %247 : vector<8x128xf32>
    %cst_92 = arith.constant 0.000000e+00 : f32
    %249 = vector.broadcast %cst_92 : f32 to vector<8x128xf32>
    %250 = arith.cmpf ogt, %248, %249 : vector<8x128xf32>
    %251 = arith.extui %250 : vector<8x128xi1> to vector<8x128xi32>
    %252 = arith.sitofp %251 : vector<8x128xi32> to vector<8x128xf32>
    %253 = arith.index_cast %c7_i32 : i32 to index
    %c0_93 = arith.constant 0 : index
    %c0_94 = arith.constant 0 : index
    %254 = vector.load %arg5[%253, %c0_93, %c0_94] : memref<8x8x128xf32, #tpu.memory_space<vmem>>, vector<1x8x128xf32>
    %255 = vector.shape_cast %254 : vector<1x8x128xf32> to vector<8x128xf32>
    %256 = vector.shape_cast %252 : vector<8x128xf32> to vector<1x8x128xf32>
    tpu.vector_store %arg5[%253, %c0_93, %c0_94], %256 {strides = array<i32>} : memref<8x8x128xf32, #tpu.memory_space<vmem>>, vector<1x8x128xf32>,
    %257 = arith.index_cast %c7_i32 : i32 to index
    %c0_95 = arith.constant 0 : index
    %c0_96 = arith.constant 0 : index
    %258 = vector.load %arg6[%257, %c0_95, %c0_96] : memref<8x8x128xf32, #tpu.memory_space<vmem>>, vector<1x8x128xf32>
    %259 = vector.shape_cast %258 : vector<1x8x128xf32> to vector<8x128xf32>
    %260 = vector.shape_cast %246 : vector<8x128xf32> to vector<1x8x128xf32>
    tpu.vector_store %arg6[%257, %c0_95, %c0_96], %260 {strides = array<i32>} : memref<8x8x128xf32, #tpu.memory_space<vmem>>, vector<1x8x128xf32>,
    %cst_97 = arith.constant dense<0.000000e+00> : vector<8xf32>
    %261 = vector.multi_reduction <add>, %252, %cst_97 [1] : vector<8x128xf32> to vector<8xf32>
    %262 = vector.shape_cast %261 : vector<8xf32> to vector<8x1xf32>
    %263 = arith.addf %232, %262 : vector<8x1xf32>
    %c8_i32_98 = arith.constant 8 : i32
    %c0_99 = arith.constant 0 : index
    %c0_100 = arith.constant 0 : index
    %264 = vector.load %arg8[%c0_99, %c0_100] : memref<8x128xf32, #tpu.memory_space<vmem>>, vector<8x128xf32>
    tpu.vector_store %arg8[%c0_99, %c0_100], %246 {strides = array<i32>} : memref<8x128xf32, #tpu.memory_space<vmem>>, vector<8x128xf32>,
    %c0_101 = arith.constant 0 : index
    %c0_102 = arith.constant 0 : index
    %265 = vector.load %arg9[%c0_101, %c0_102] : memref<8x128xf32, #tpu.memory_space<vmem>>, vector<8x128xf32>
    tpu.vector_store %arg9[%c0_101, %c0_102], %252 {strides = array<i32>} : memref<8x128xf32, #tpu.memory_space<vmem>>, vector<8x128xf32>,
    %266 = arith.mulf %263, %12 : vector<8x1xf32>
    %c0_103 = arith.constant 0 : index
    %c0_104 = arith.constant 0 : index
    %c0_105 = arith.constant 0 : index
    %267 = vector.load %arg7[%c0_103, %c0_104, %c0_105] : memref<1x1x1xf32, #tpu.memory_space<vmem>>, vector<1x1x1xf32>
    %268 = vector.shape_cast %267 : vector<1x1x1xf32> to vector<1x1xf32>
    %cst_106 = arith.constant dense<0.000000e+00> : vector<1xf32>
    %269 = vector.multi_reduction <add>, %266, %cst_106 [0] : vector<8x1xf32> to vector<1xf32>
    %270 = vector.shape_cast %269 : vector<1xf32> to vector<1x1xf32>
    %271 = arith.addf %268, %270 : vector<1x1xf32>
    %c0_107 = arith.constant 0 : index
    %c0_108 = arith.constant 0 : index
    %c0_109 = arith.constant 0 : index
    %272 = vector.load %arg7[%c0_107, %c0_108, %c0_109] : memref<1x1x1xf32, #tpu.memory_space<vmem>>, vector<1x1x1xf32>
    %273 = vector.shape_cast %272 : vector<1x1x1xf32> to vector<1x1xf32>
    %274 = vector.shape_cast %271 : vector<1x1xf32> to vector<1x1x1xf32>
    tpu.vector_store %arg7[%c0_107, %c0_108, %c0_109], %274 {strides = array<i32>} : memref<1x1x1xf32, #tpu.memory_space<vmem>>, vector<1x1x1xf32>,
    return
  }
  func.func @transform_0(%arg0: i32, %arg1: i32) -> (i32, i32, i32) {
    %c0_i32 = arith.constant 0 : i32
    %c0_i32_0 = arith.constant 0 : i32
    return %arg1, %arg0, %c0_i32 : i32, i32, i32
  }
  func.func @transform_1(%arg0: i32, %arg1: i32) -> (i32, i32) {
    %c0_i32 = arith.constant 0 : i32
    %c0_i32_0 = arith.constant 0 : i32
    %c0_i32_1 = arith.constant 0 : i32
    return %c0_i32, %c0_i32_0 : i32, i32
  }
  func.func @transform_2(%arg0: i32, %arg1: i32) -> (i32, i32) {
    %c0_i32 = arith.constant 0 : i32
    %c0_i32_0 = arith.constant 0 : i32
    %c0_i32_1 = arith.constant 0 : i32
    return %c0_i32, %c0_i32_0 : i32, i32
  }
  func.func @transform_3(%arg0: i32, %arg1: i32) -> (i32, i32, i32) {
    %c0_i32 = arith.constant 0 : i32
    %c0_i32_0 = arith.constant 0 : i32
    return %arg1, %arg0, %c0_i32 : i32, i32, i32
  }
  func.func @transform_4(%arg0: i32, %arg1: i32) -> (i32, i32, i32) {
    %c0_i32 = arith.constant 0 : i32
    %c0_i32_0 = arith.constant 0 : i32
    return %arg1, %arg0, %c0_i32 : i32, i32, i32
  }
  func.func @transform_5(%arg0: i32, %arg1: i32) -> (i32, i32, i32) {
    %c0_i32 = arith.constant 0 : i32
    %c0_i32_0 = arith.constant 0 : i32
    %c0_i32_1 = arith.constant 0 : i32
    return %arg0, %c0_i32, %c0_i32_0 : i32, i32, i32
  }
}

</mosaic_0001>

<bundles_post_ra>
// kernel: tpu_custom_call.1
= control target key start
LH: loop header
LB: loop body
LE: loop exit
PB: predicated region body
PF: predicated region fallthrough
CT: control target
= control target key end

     0   :  { %s1434_s0 = inlined_call_operand.vmem [shape: f32[16,8,1], index: 0, kind: input, shape index: {}]   ;;  %s1435_s1 = inlined_call_operand.vmem [shape: bf16[128,128], index: 1, kind: input, shape index: {}]   ;;  %s1436_s2 = inlined_call_operand.vmem [shape: f32[1,128], index: 2, kind: input, shape index: {}]   ;;  %s1437_s3 = inlined_call_operand.hbm [shape: f32[16,8,128], index: 3, kind: output, shape index: {0}]   ;;  %s1438_s4 = inlined_call_operand.hbm [shape: f32[16,8,128], index: 4, kind: output, shape index: {1}]   ;;  %s1439_s5 = inlined_call_operand.hbm [shape: f32[1,1,1], index: 5, kind: output, shape index: {2}]  }
   0x1   :  { %1442 = sst [smem:[#allocation12_spill]] %s1434_s0 }
   0x2   :  { %1443 = sst [smem:[#allocation13_spill]] %s1435_s1 }
   0x3   :  { %1444 = sst [smem:[#allocation14_spill]] %s1436_s2 }
   0x4   :  { %11 = vsyncpa [#allocation5], 0 }
   0x5   :  { %13 = vsyncpa [#allocation5 + $0x1], 0 }
   0x6   :  { %14 = vsyncpa [#allocation7], 0 }
   0x7   :  { %16 = vsyncpa [#allocation7 + $0x1], 0  ;;  %s1206_s18 = smov 0   ;;  %s1208_s19 = smov 0  }
   0x8   :  { %s1210_s20 = smov 0   ;;  %s1212_s21 = smov 0  }
   0x9   :  { %s1214_s22 = smov 0   ;;  %s1216_s23 = smov 0  }
   0xa LB: > { %s834_s24 = sadd.s32 4294967295, %s1167_s23   ;;  %s1440_s25 = sadd.s32 4294967294, %s1167_s23   ;;  %s1167_s23 = sphi %s1216_s23, %s22_s23   ;;  %s1163_s22 = sphi %s1214_s22, %s1457_s22   ;;  %s1159_s21 = sphi %s1212_s21, %s1456_s21   ;;  %s1155_s20 = sphi %s1210_s20, %s1455_s20   ;;  %s1151_s19 = sphi %s1208_s19, %s1454_s19   ;;  %s1147_s18 = sphi %s1206_s18, %s1453_s18  }
   0xb   : > { %s31_s26 = sadd.s32 1, %s1163_s22  ;;  %s113_s27 = sadd.s32 1, %s1155_s20 }
   0xc   : > { %p32_p0 = scmp.ge.s32.totalorder %s31_s26, 2  ;;  %p123_p1 = scmp.ne.s32.totalorder %s1155_s20, %s1151_s19 }
   0xd   : > { %p1244_p2 = scmp.eq.s32.totalorder %s834_s24, 1  ;;  %p129_p3 = scmp.ne.s32.totalorder %s1151_s19, %s1147_s18 }
   0xe   : > { %s1459_s26 = smov (%p32_p0, %s31_s26), 0  ;;  %p130_p5 = scmp.eq.s32.totalorder %s1440_s25, 1 }
   0xf   : > { %p1254_p4 = por %p1244_p2, %p123_p1  ;;  %s108_s30 = ssub.s32 %s1163_s22, %s1459_s26 }
  0x10   : > { %p838_p6 = scmp.ge.s32.totalorder %s1167_s23, 1  ;;  %p111_p7 = scmp.eq.s32.totalorder %s108_s30, 0 }
  0x11   : > { %p1263_p8 = por %p130_p5, %p129_p3  ;;  %p220_p9 = scmp.lt.s32.totalorder %s1167_s23, 3 }
  0x12   : > { %s1269_s7 = scalar_select %p111_p7, %s1155_s20, %s113_s27  }
  0x13   : > { %p221_p10 = pnand %p838_p6, %p220_p9 }
  0x14   : > { %s1441_s8 = sand.u32 (!%p221_p10), 1, %s1151_s19   ;;  %s841_s9 = sshll.u32 (!%p221_p10), %s1159_s21, 3 }
  0x15   : > { %224 = sbr.rel (%p221_p10) target bundleno = 1371 (0x55b), region = 32  ;;  %s839_s10 = sshll.u32 (!%p221_p10), %s1441_s8, 6 }
  0x16   : > { %p257_p11 = scmp.lt.s32.totalorder (!%p221_p10), %s841_s9, 15  ;;  %s1448_s0 = sld [smem:[#allocation12_spill]] (!%p221_p10) }
  0x17   : > { %s1280_s15 = scalar_lea.vmem (!%p221_p10), [#allocation4], %s839_s10  ;;  %s1282_s16 = scalar_lea.vmem (!%p221_p10), [#allocation6], %s839_s10 }
  0x18   : > { %p843_p12 = scmp.ne.s32.totalorder (!%p221_p10), %s1159_s21, 0 }
  0x1a   : > { %s1461_s9 = smov (!%p257_p11, %s841_s9), 15  ;;  %270 = sbr.rel (%p843_p12) target bundleno = 35 (0x23), region = 36 }
  0x1b   : > { %s842_s11 = sshll.u32 %s1461_s9, 3 }
  0x1c   : > { %s1278_s14 = scalar_lea.vmem %s1448_s0, %s842_s11 }
  0x1f   : > { %vm273_vm0 = vcmask 0   ;;  %v1169_v0 = vmov 0.0  }
  0x20   : > { %271 = vst [vmem:[#allocation2] sm:$0xff] %v1169_v0 }
  0x21   : > { %272 = vst [vmem:[#allocation3] sm:$0xff] %v1169_v0 }
  0x22   : > { %274 = vst.msk [vmem:[#allocation8] sm:$0x1] %vm273_vm0, %v1169_v0 }
  0x23 PF: > { %s1449_s1 = sld [smem:[#allocation13_spill]]  ;;  %v302_v5 = vld [vmem:[%s1278_s14] sm:$0xff]  ;;  %v1170_v6 = vmov 0   ;;  %v879_v8 = vld [vmem:[%s1278_s14 + $0x8] sm:$0xff]  ;;  %v886_v9 = vld [vmem:[%s1278_s14 + $0x10] sm:$0xff]  ;;  %v1171_v31 = vmov 0.0  }
  0x24   : > { %1021 = vset.pattern.permute.xlu0 %v1170_v6  ;;  %1022 = vset.pattern.permute.xlu1 %v1170_v6  ;;  %v893_v11 = vld [vmem:[%s1278_s14 + $0x18] sm:$0xff]  ;;  %v914_v12 = vld [vmem:[%s1278_s14 + $0x30] sm:$0xff]  ;;  %v900_v17 = vld [vmem:[%s1278_s14 + $0x20] sm:$0xff]  ;;  %s1450_s2 = sld [smem:[#allocation14_spill]]  ;;  %v1172_v33 = vmov 1.0|1.0  }
  0x25   : > { %371 = vperm.xlu0 %1021, %v302_v5   ;;  %1023 = vset.pattern.permute.xlu2 %v1170_v6  ;;  %v907_v18 = vld [vmem:[%s1278_s14 + $0x28] sm:$0xff]  ;;  %s946_s30 = sshll.u32 %s1159_s21, 6  ;;  %s696_s12 = sshll.u32 %s1282_s16, 4  ;;  %s697_s12 = int_to_ptr.vmem [resolvable:$true] %s696_s12 }
  0x26   : > { %443 = vperm.xlu1 %1022, %v886_v9   ;;  %517 = vperm.xlu2 %1023, %v900_v17   ;;  %s695_s11 = scalar_lea.hbm %s1438_s4, %s946_s30  ;;  %s1045_s21 = scalar_lea.hbm %s1438_s4, 128 }
  0x27   : > { %v300_v19 = vld [vmem:[#allocation2] sm:$0xff]  ;;  %s698_s13 = sshll.u32 %s695_s11, 4  ;;  %s699_s13 = int_to_ptr.hbm [resolvable:$true] %s698_s13 }
  0x28   : > { %v301_v15 = vld [vmem:[#allocation3] sm:$0xff]  ;;  %v368_v20 = vmul.f32 0.9, %v300_v19  ;;  %s1039_s27 = sshra.s32 %s699_s13, 4  ;;  %s1040_s27 = int_to_ptr.hbm [resolvable:$true] %s1039_s27 }
  0x29   : > { %v945_v1 = vld [vmem:[%s1449_s1 + $0x38] sm:$0xff]  ;;  %v944_v2 = vld [vmem:[%s1449_s1 + $0x30] sm:$0xff]  ;;  %v943_v3 = vld [vmem:[%s1449_s1 + $0x28] sm:$0xff]  ;;  %v303_v16 = vpack.c.bf16 %v301_v15, %v301_v15  ;;  %s1041_s25 = scalar_lea.hbm %s1040_s27, 64  ;;  %p1046_p3 = scmp.lt.s32.totalorder %s1040_s27, %s1438_s4 }
  0x2a   : > { %355 = vmatpush.bf16.xpose.msra.mxu0 %v945_v1  ;;  %390 = vmatpush.bf16.xpose.msra.mxu1 %v945_v1  ;;  %v942_v4 = vld [vmem:[%s1449_s1 + $0x20] sm:$0xff]  ;;  %v941_v7 = vld [vmem:[%s1449_s1 + $0x18] sm:$0xff]  ;;  %v940_v10 = vld [vmem:[%s1449_s1 + $0x10] sm:$0xff]  ;;  %p1042_p13 = scmp.ne.s32.totalorder %s1040_s27, %s1041_s25  ;;  %p1047_p5 = scmp.lt.s32.totalorder %s1045_s21, %s1041_s25 }
  0x2b   : > { %427 = vmatpush.bf16.xpose.msra.mxu2 %v945_v1  ;;  %464 = vmatpush.bf16.xpose.msra.mxu3 %v945_v1  ;;  %v939_v13 = vld [vmem:[%s1449_s1 + $0x8] sm:$0xff]  ;;  %v938_v14 = vld [vmem:[%s1449_s1] sm:$0xff] }
  0x2c   : > { %v1319_v21 = vld [vmem:[%s1450_s2] ss:$0 sm:$0xff]  ;;  %p1043_p0 = pnand %p1042_p13, %p1254_p4  ;;  %p1048_p6 = por %p1047_p5, %p1046_p3 }
  0x2d   : > { %406 = vperm.xlu0 %1021, %v879_v8  }
  0x2e   : > { %480 = vperm.xlu1 %1022, %v893_v11   ;;  %554 = vperm.xlu2 %1023, %v907_v18   ;;  %p1044_p1 = pneg %p1043_p0 }
  0x30   : > { %p1049_p7 = pnand %p1048_p6, %p1044_p1 }
  0x32   : > { %356 = vmatpush.bf16.xpose.msra.mxu0 %v944_v2  ;;  %391 = vmatpush.bf16.xpose.msra.mxu1 %v944_v2 }
  0x33   : > { %428 = vmatpush.bf16.xpose.msra.mxu2 %v944_v2  ;;  %465 = vmatpush.bf16.xpose.msra.mxu3 %v944_v2 }
  0x35   : > { %591 = vperm.xlu0 %1021, %v914_v12  }
  0x3a   : > { %357 = vmatpush.bf16.xpose.msra.mxu0 %v943_v3  ;;  %392 = vmatpush.bf16.xpose.msra.mxu1 %v943_v3 }
  0x3b   : > { %429 = vmatpush.bf16.xpose.msra.mxu2 %v943_v3  ;;  %466 = vmatpush.bf16.xpose.msra.mxu3 %v943_v3 }
  0x42   : > { %358 = vmatpush.bf16.xpose.msra.mxu0 %v942_v4  ;;  %393 = vmatpush.bf16.xpose.msra.mxu1 %v942_v4 }
  0x43   : > { %430 = vmatpush.bf16.xpose.msra.mxu2 %v942_v4  ;;  %467 = vmatpush.bf16.xpose.msra.mxu3 %v942_v4 }
  0x4a   : > { %359 = vmatpush.bf16.xpose.msra.mxu0 %v941_v7  ;;  %394 = vmatpush.bf16.xpose.msra.mxu1 %v941_v7 }
  0x4b   : > { %431 = vmatpush.bf16.xpose.msra.mxu2 %v941_v7  ;;  %468 = vmatpush.bf16.xpose.msra.mxu3 %v941_v7 }
  0x52   : > { %360 = vmatpush.bf16.xpose.msra.mxu0 %v940_v10  ;;  %395 = vmatpush.bf16.xpose.msra.mxu1 %v940_v10 }
  0x53   : > { %432 = vmatpush.bf16.xpose.msra.mxu2 %v940_v10  ;;  %469 = vmatpush.bf16.xpose.msra.mxu3 %v940_v10 }
  0x5a   : > { %361 = vmatpush.bf16.xpose.msra.mxu0 %v939_v13  ;;  %396 = vmatpush.bf16.xpose.msra.mxu1 %v939_v13 }
  0x5b   : > { %433 = vmatpush.bf16.xpose.msra.mxu2 %v939_v13  ;;  %470 = vmatpush.bf16.xpose.msra.mxu3 %v939_v13 }
  0x62   : > { %362 = vmatpush.bf16.xpose.msra.mxu0 %v938_v14  ;;  %397 = vmatpush.bf16.xpose.msra.mxu1 %v938_v14 }
  0x63   : > { %434 = vmatpush.bf16.xpose.msra.mxu2 %v938_v14  ;;  %471 = vmatpush.bf16.xpose.msra.mxu3 %v938_v14 }
  0x69   : > { %363 = vmatmul.bf16.vlgmr.msra.gmra.mxu0 %v303_v16 }
  0x6a   : > { %501 = vmatpush.bf16.xpose.msrb.mxu0 %v945_v1  ;;  %538 = vmatpush.bf16.xpose.msrb.mxu1 %v945_v1 }
  0x6b   : > { %575 = vmatpush.bf16.xpose.msrb.mxu2 %v945_v1  ;;  %612 = vmatpush.bf16.xpose.msrb.mxu3 %v945_v1 }
  0x72   : > { %502 = vmatpush.bf16.xpose.msrb.mxu0 %v944_v2  ;;  %539 = vmatpush.bf16.xpose.msrb.mxu1 %v944_v2 }
  0x73   : > { %576 = vmatpush.bf16.xpose.msrb.mxu2 %v944_v2  ;;  %613 = vmatpush.bf16.xpose.msrb.mxu3 %v944_v2 }
  0x7a   : > { %503 = vmatpush.bf16.xpose.msrb.mxu0 %v943_v3  ;;  %540 = vmatpush.bf16.xpose.msrb.mxu1 %v943_v3 }
  0x7b   : > { %577 = vmatpush.bf16.xpose.msrb.mxu2 %v943_v3  ;;  %614 = vmatpush.bf16.xpose.msrb.mxu3 %v943_v3 }
  0x82   : > { %504 = vmatpush.bf16.xpose.msrb.mxu0 %v942_v4  ;;  %541 = vmatpush.bf16.xpose.msrb.mxu1 %v942_v4 }
  0x83   : > { %578 = vmatpush.bf16.xpose.msrb.mxu2 %v942_v4  ;;  %615 = vmatpush.bf16.xpose.msrb.mxu3 %v942_v4  ;;  %v518_v4 = vpop.permute.xlu2 %517 }
  0x8a   : > { %505 = vmatpush.bf16.xpose.msrb.mxu0 %v941_v7  ;;  %542 = vmatpush.bf16.xpose.msrb.mxu1 %v941_v7 }
  0x8b   : > { %579 = vmatpush.bf16.xpose.msrb.mxu2 %v941_v7  ;;  %616 = vmatpush.bf16.xpose.msrb.mxu3 %v941_v7  ;;  %v555_v16 = vpop.permute.xlu2 %554 }
  0x92   : > { %506 = vmatpush.bf16.xpose.msrb.mxu0 %v940_v10  ;;  %543 = vmatpush.bf16.xpose.msrb.mxu1 %v940_v10 }
  0x93   : > { %580 = vmatpush.bf16.xpose.msrb.mxu2 %v940_v10  ;;  %617 = vmatpush.bf16.xpose.msrb.mxu3 %v940_v10 }
  0x97   : > { %v372_v22 = vpop.permute.xlu0 %371 }
  0x98   : > { %v374_v23 = vadd.f32 %v372_v22, %v368_v20  ;;  %v444_v46 = vpop.permute.xlu1 %443 }
  0x9a   : > { %507 = vmatpush.bf16.xpose.msrb.mxu0 %v939_v13  ;;  %544 = vmatpush.bf16.xpose.msrb.mxu1 %v939_v13 }
  0x9b   : > { %581 = vmatpush.bf16.xpose.msrb.mxu2 %v939_v13  ;;  %618 = vmatpush.bf16.xpose.msrb.mxu3 %v939_v13 }
  0x9f   : > { %v407_v35 = vpop.permute.xlu0 %406 }
  0xa0   : > { %v481_v57 = vpop.permute.xlu1 %480 }
  0xa2   : > { %508 = vmatpush.bf16.xpose.msrb.mxu0 %v938_v14  ;;  %545 = vmatpush.bf16.xpose.msrb.mxu1 %v938_v14 }
  0xa3   : > { %582 = vmatpush.bf16.xpose.msrb.mxu2 %v938_v14  ;;  %619 = vmatpush.bf16.xpose.msrb.mxu3 %v938_v14  ;;  %v921_v14 = vld [vmem:[%s1278_s14 + $0x38] sm:$0xff]  ;;  %s664_s14 = sand.u32 1, %s834_s24  }
  0xa4   : > { %s665_s17 = scalar_lea.sflag [#allocation7], %s664_s14 }
  0xe6   : > { %v364_v24 = vpop.f32.mrf.mxu0 }
  0xe7   : > { %v365_v25 = vadd.f32 %v1319_v21, %v364_v24 }
  0xe9   : > { %v375_v26 = vadd.f32 %v374_v23, %v365_v25 }
  0xeb   : > { %v376_v27 = vmul.f32 %v375_v26, %v301_v15 }
  0xed   : > { %v377_v28 = vsub.f32 %v375_v26, %v376_v27 }
  0xee   : > { %v366_v29 = vpop.f32.mrf.mxu0 }
  0xef   : > { %383 = vst [vmem:[%s1282_s16] sm:$0xff] %v377_v28  ;;  %v877_v30 = vadd.f32 -1.0, %v377_v28  ;;  %v403_v34 = vmul.f32 0.9, %v377_v28  ;;  %v592_v28 = vpop.permute.xlu0 %591 }
  0xf1   : > { %vm379_vm1 = vcmp.gt.f32.partialorder %v877_v30, 0.0  ;;  %v409_v38 = vadd.f32 %v407_v35, %v403_v34 }
  0xf2   : > { %vm880_vm2 = vmpackc.low %vm379_vm1, %vm379_vm1  ;;  %v878_v32 = vsel %vm379_vm1, 1.0, %v1171_v31 }
  0xf3   : > { %881 = vmatmul.msk.bf16.vlgmr.msra.gmra.mxu1 %vm880_vm2, %v1172_v33  ;;  %384 = vadd.xlane.f32.xlu1 %v878_v32  ;;  %382 = vst [vmem:[%s1280_s15] sm:$0xff] %v878_v32 }
 0x170   : > { %v399_v36 = vpop.f32.mrf.mxu1 }
 0x171   : > { %v400_v37 = vadd.f32 %v1319_v21, %v399_v36 }
 0x173   : > { %v410_v39 = vadd.f32 %v409_v38, %v400_v37 }
 0x175   : > { %v411_v40 = vmul.f32 %v878_v32, %v410_v39 }
 0x177   : > { %v412_v41 = vsub.f32 %v410_v39, %v411_v40  ;;  %v1357_v40 = vpop.xlane.xlu1 %384 }
 0x178   : > { %v401_v42 = vpop.f32.mrf.mxu1 }
 0x179   : > { %885 = vst [vmem:[%s1282_s16 + $0x8] sm:$0xff] %v412_v41  ;;  %v882_v43 = vadd.f32 -1.0, %v412_v41  ;;  %v440_v45 = vmul.f32 0.9, %v412_v41 }
 0x17b   : > { %vm414_vm3 = vcmp.gt.f32.partialorder %v882_v43, 0.0  ;;  %v446_v49 = vadd.f32 %v444_v46, %v440_v45 }
 0x17c   : > { %vm887_vm4 = vmpackc.low %vm414_vm3, %vm414_vm3  ;;  %v883_v44 = vsel %vm414_vm3, 1.0, %v1171_v31 }
 0x17d   : > { %888 = vmatmul.msk.bf16.vlgmr.msra.gmra.mxu2 %vm887_vm4, %v1172_v33  ;;  %421 = vadd.xlane.f32.xlu2 %v883_v44  ;;  %884 = vst [vmem:[%s1280_s15 + $0x8] sm:$0xff] %v883_v44 }
 0x200   : > { %v436_v47 = vpop.f32.mrf.mxu2 }
 0x201   : > { %v437_v48 = vadd.f32 %v1319_v21, %v436_v47 }
 0x203   : > { %v447_v50 = vadd.f32 %v446_v49, %v437_v48 }
 0x205   : > { %v448_v51 = vmul.f32 %v883_v44, %v447_v50 }
 0x207   : > { %v449_v52 = vsub.f32 %v447_v50, %v448_v51 }
 0x208   : > { %v438_v53 = vpop.f32.mrf.mxu2 }
 0x209   : > { %892 = vst [vmem:[%s1282_s16 + $0x10] sm:$0xff] %v449_v52  ;;  %v889_v54 = vadd.f32 -1.0, %v449_v52  ;;  %v477_v56 = vmul.f32 0.9, %v449_v52 }
 0x20b   : > { %vm451_vm5 = vcmp.gt.f32.partialorder %v889_v54, 0.0  ;;  %v483_v60 = vadd.f32 %v481_v57, %v477_v56 }
 0x20c   : > { %vm894_vm6 = vmpackc.low %vm451_vm5, %vm451_vm5  ;;  %v890_v55 = vsel %vm451_vm5, 1.0, %v1171_v31 }
 0x20d   : > { %895 = vmatmul.msk.bf16.vlgmr.msra.gmra.mxu3 %vm894_vm6, %v1172_v33  ;;  %458 = vadd.xlane.f32.xlu0 %v890_v55  ;;  %891 = vst [vmem:[%s1280_s15 + $0x10] sm:$0xff] %v890_v55 }
 0x290   : > { %v473_v58 = vpop.f32.mrf.mxu3 }
 0x291   : > { %v474_v59 = vadd.f32 %v1319_v21, %v473_v58 }
 0x293   : > { %v484_v61 = vadd.f32 %v483_v60, %v474_v59 }
 0x295   : > { %v485_v62 = vmul.f32 %v890_v55, %v484_v61 }
 0x297   : > { %v486_v63 = vsub.f32 %v484_v61, %v485_v62 }
 0x298   : > { %v475_v0 = vpop.f32.mrf.mxu3 }
 0x299   : > { %899 = vst [vmem:[%s1282_s16 + $0x18] sm:$0xff] %v486_v63  ;;  %v896_v1 = vadd.f32 -1.0, %v486_v63  ;;  %v514_v3 = vmul.f32 0.9, %v486_v63 }
 0x29b   : > { %vm488_vm7 = vcmp.gt.f32.partialorder %v896_v1, 0.0  ;;  %v520_v7 = vadd.f32 %v518_v4, %v514_v3 }
 0x29c   : > { %vm901_vm8 = vmpackc.low %vm488_vm7, %vm488_vm7  ;;  %v897_v2 = vsel %vm488_vm7, 1.0, %v1171_v31 }
 0x29d   : > { %902 = vmatmul.msk.bf16.vlgmr.msrb.gmra.mxu0 %vm901_vm8, %v1172_v33  ;;  %495 = vadd.xlane.f32.xlu2 %v897_v2  ;;  %898 = vst [vmem:[%s1280_s15 + $0x18] sm:$0xff] %v897_v2 }
 0x31a   : > { %v510_v5 = vpop.f32.mrf.mxu0 }
 0x31b   : > { %v511_v6 = vadd.f32 %v1319_v21, %v510_v5 }
 0x31d   : > { %v521_v8 = vadd.f32 %v520_v7, %v511_v6 }
 0x31f   : > { %v522_v9 = vmul.f32 %v897_v2, %v521_v8 }
 0x321   : > { %v523_v10 = vsub.f32 %v521_v8, %v522_v9 }
 0x322   : > { %v512_v11 = vpop.f32.mrf.mxu0 }
 0x323   : > { %906 = vst [vmem:[%s1282_s16 + $0x20] sm:$0xff] %v523_v10  ;;  %v903_v12 = vadd.f32 -1.0, %v523_v10  ;;  %v551_v15 = vmul.f32 0.9, %v523_v10 }
 0x325   : > { %vm525_vm9 = vcmp.gt.f32.partialorder %v903_v12, 0.0  ;;  %v557_v19 = vadd.f32 %v555_v16, %v551_v15 }
 0x326   : > { %vm908_vm10 = vmpackc.low %vm525_vm9, %vm525_vm9  ;;  %v904_v13 = vsel %vm525_vm9, 1.0, %v1171_v31 }
 0x327   : > { %909 = vmatmul.msk.bf16.vlgmr.msrb.gmra.mxu1 %vm908_vm10, %v1172_v33  ;;  %532 = vadd.xlane.f32.xlu1 %v904_v13  ;;  %905 = vst [vmem:[%s1280_s15 + $0x20] sm:$0xff] %v904_v13 }
 0x340   : > { %628 = vperm.xlu1 %1022, %v921_v14  }
 0x39a   : > { %v1359_v41 = vpop.xlane.xlu1 %532 }
 0x3a4   : > { %v547_v17 = vpop.f32.mrf.mxu1 }
 0x3a5   : > { %v548_v18 = vadd.f32 %v1319_v21, %v547_v17 }
 0x3a7   : > { %v558_v20 = vadd.f32 %v557_v19, %v548_v18 }
 0x3a9   : > { %v559_v22 = vmul.f32 %v904_v13, %v558_v20 }
 0x3ab   : > { %v560_v23 = vsub.f32 %v558_v20, %v559_v22 }
 0x3ac   : > { %v549_v24 = vpop.f32.mrf.mxu1 }
 0x3ad   : > { %913 = vst [vmem:[%s1282_s16 + $0x28] sm:$0xff] %v560_v23  ;;  %v910_v25 = vadd.f32 -1.0, %v560_v23  ;;  %v588_v27 = vmul.f32 0.9, %v560_v23 }
 0x3af   : > { %vm562_vm11 = vcmp.gt.f32.partialorder %v910_v25, 0.0  ;;  %v594_v32 = vadd.f32 %v592_v28, %v588_v27 }
 0x3b0   : > { %vm915_vm12 = vmpackc.low %vm562_vm11, %vm562_vm11  ;;  %v911_v26 = vsel %vm562_vm11, 1.0, %v1171_v31 }
 0x3b1   : > { %916 = vmatmul.msk.bf16.vlgmr.msrb.gmra.mxu2 %vm915_vm12, %v1172_v33  ;;  %569 = vadd.xlane.f32.xlu2 %v911_v26  ;;  %912 = vst [vmem:[%s1280_s15 + $0x28] sm:$0xff] %v911_v26 }
 0x3b2   : > { %v629_v43 = vpop.permute.xlu1 %628 }
 0x434   : > { %v584_v29 = vpop.f32.mrf.mxu2 }
 0x435   : > { %v585_v30 = vadd.f32 %v1319_v21, %v584_v29 }
 0x437   : > { %v595_v34 = vadd.f32 %v594_v32, %v585_v30 }
 0x439   : > { %v596_v35 = vmul.f32 %v911_v26, %v595_v34 }
 0x43b   : > { %v597_v36 = vsub.f32 %v595_v34, %v596_v35 }
 0x43c   : > { %v586_v37 = vpop.f32.mrf.mxu2 }
 0x43d   : > { %920 = vst [vmem:[%s1282_s16 + $0x30] sm:$0xff] %v597_v36  ;;  %v917_v38 = vadd.f32 -1.0, %v597_v36  ;;  %v625_v42 = vmul.f32 0.9, %v597_v36 }
 0x43f   : > { %vm599_vm13 = vcmp.gt.f32.partialorder %v917_v38, 0.0  ;;  %v631_v46 = vadd.f32 %v629_v43, %v625_v42 }
 0x440   : > { %vm922_vm14 = vmpackc.low %vm599_vm13, %vm599_vm13  ;;  %v918_v39 = vsel %vm599_vm13, 1.0, %v1171_v31 }
 0x441   : > { %923 = vmatmul.msk.bf16.vlgmr.msrb.gmra.mxu3 %vm922_vm14, %v1172_v33  ;;  %606 = vadd.xlane.f32.xlu0 %v918_v39  ;;  %919 = vst [vmem:[%s1280_s15 + $0x30] sm:$0xff] %v918_v39 }
 0x4c4   : > { %v621_v44 = vpop.f32.mrf.mxu3 }
 0x4c5   : > { %v622_v45 = vadd.f32 %v1319_v21, %v621_v44 }
 0x4c7   : > { %v632_v47 = vadd.f32 %v631_v46, %v622_v45 }
 0x4c9   : > { %v633_v48 = vmul.f32 %v918_v39, %v632_v47 }
 0x4cb   : > { %v634_v49 = vsub.f32 %v632_v47, %v633_v48 }
 0x4cc   : > { %v623_v33 = vpop.f32.mrf.mxu3 }
 0x4cd   : > { %927 = vst [vmem:[%s1282_s16 + $0x38] sm:$0xff] %v634_v49  ;;  %v924_v50 = vadd.f32 -1.0, %v634_v49 }
 0x4ce   : > { %646 = vst [vmem:[#allocation2] sm:$0xff] %v634_v49 }
 0x4cf   : > { %vm636_vm15 = vcmp.gt.f32.partialorder %v924_v50, 0.0 }
 0x4d0   : > { %v925_v51 = vsel %vm636_vm15, 1.0, %v1171_v31 }
 0x4d1   : > { %643 = vadd.xlane.f32.xlu2 %v925_v51  ;;  %926 = vst [vmem:[%s1280_s15 + $0x38] sm:$0xff] %v925_v51 }
 0x4d2   : > { %647 = vst [vmem:[#allocation3] sm:$0xff] %v925_v51 }
 0x4d3   : > { %1052 = shalt.err (!%p1049_p7)
}
 0x4d4   : > { %s1173_s16 = smov 128   ;;  %s1174_s14 = smov 8  }
 0x4d5   : > { %949 = dma.vmem_to_hbm [thread:$0]  (%p1254_p4), %s697_s12, 1024, %s699_s13, %s665_s17, %s1173_s16, %s1173_s16, %s1174_s14  }
 0x4d6   : > { %s677_s0 = scalar_lea.hbm %s1437_s3, %s946_s30  ;;  %s678_s8 = sshll.u32 %s1280_s15, 4  ;;  %s679_s8 = int_to_ptr.vmem [resolvable:$true] %s678_s8 }
 0x4d7   : > { %s680_s11 = sshll.u32 %s677_s0, 4  ;;  %s1451_s1 = sand.u32 1, %s1151_s19   ;;  %s681_s11 = int_to_ptr.hbm [resolvable:$true] %s680_s11 }
 0x4d8   : > { %s660_s25 = scalar_lea.sflag [#allocation5], %s1451_s1  ;;  %s1067_s27 = sshra.s32 %s681_s11, 4  ;;  %s1068_s27 = int_to_ptr.hbm [resolvable:$true] %s1067_s27 }
 0x4d9   : > { %s1069_s21 = scalar_lea.hbm %s1068_s27, 64  ;;  %s1073_s12 = scalar_lea.hbm %s1437_s3, 128 }
 0x4da   : > { %p1070_p9 = scmp.ne.s32.totalorder %s1068_s27, %s1069_s21  ;;  %p1074_p12 = scmp.lt.s32.totalorder %s1068_s27, %s1437_s3 }
 0x4db   : > { %p1075_p13 = scmp.lt.s32.totalorder %s1073_s12, %s1069_s21 }
 0x4dc   : > { %p1071_p10 = pnand %p1070_p9, %p1254_p4 }
 0x4dd   : > { %p1076_p0 = por %p1075_p13, %p1074_p12 }
 0x4de   : > { %p1072_p11 = pneg %p1071_p10 }
 0x4e0   : > { %p1077_p1 = pnand %p1076_p0, %p1072_p11 }
 0x4e2   : > { %1080 = shalt.err (!%p1077_p1)
}
 0x4e3   : > { %948 = dma.vmem_to_hbm [thread:$0]  (%p1254_p4), %s679_s8, 1024, %s681_s11, %s660_s25, %s1173_s16, %s1173_s16, %s1174_s14   ;;  %v422_v21 = vpop.xlane.xlu2 %421  ;;  %v459_v53 = vpop.xlane.xlu0 %458  ;;  %v292_v55 = vlaneseq  ;;  %v649_v9 = vld [vmem:[#allocation8] sm:$0x1]  ;;  %vm657_vm1 = vcmask 0  }
 0x4e4   : > { %v423_v54 = vadd.f32 %v422_v21, %v1357_v40  ;;  %s1175_s2 = smov [#allocation8]   ;;  %s714_s16 = sshll.u32 %s1439_s5, 4  ;;  %s715_s16 = int_to_ptr.hbm [resolvable:$true] %s714_s16 }
 0x4e5   : > { %v293_v59 = vshrl.u32 %v292_v55, 7  ;;  %s712_s29 = sshll.u32 %s1175_s2, 4  ;;  %s713_s29 = int_to_ptr.vmem [resolvable:$true] %s712_s29 }
 0x4e6   : > { %v460_v56 = vadd.f32 %v459_v53, %v423_v54 }
 0x4e7   : > { %vm297_vm0 = vcmp.lt.s32.totalorder %v293_v59, 4 }
 0x4e8   : > { %v844_v0 = vsel %vm297_vm0, 1.0, %v1171_v31 }
 0x4eb   : > { %v496_v52 = vpop.xlane.xlu2 %495  ;;  %v607_v61 = vpop.xlane.xlu0 %606 }
 0x4ec   : > { %v497_v58 = vadd.f32 %v496_v52, %v460_v56 }
 0x4ee   : > { %v534_v60 = vadd.f32 %v1359_v41, %v497_v58 }
 0x4f3   : > { %v570_v57 = vpop.xlane.xlu2 %569 }
 0x4f4   : > { %v571_v62 = vadd.f32 %v570_v57, %v534_v60 }
 0x4f6   : > { %v608_v63 = vadd.f32 %v607_v61, %v571_v62 }
 0x544   : > { %v644_v1 = vpop.xlane.xlu2 %643 }
 0x545   : > { %v645_v2 = vadd.f32 %v644_v1, %v608_v63 }
 0x547   : > { %v648_v3 = vmul.f32 %v844_v0, %v645_v2 }
 0x549   : > { %v650_v4 = vrot.slane %v648_v3, 4 }
 0x54b   : > { %v651_v5 = vadd.f32 %v650_v4, %v648_v3 }
 0x54d   : > { %v652_v6 = vrot.slane %v651_v5, 2 }
 0x54f   : > { %v653_v7 = vadd.f32 %v652_v6, %v651_v5 }
 0x551   : > { %v654_v8 = vrot.slane %v653_v7, 1 }
 0x553   : > { %v655_v10 = vadd.f32 %v654_v8, %v653_v7 }
 0x555   : > { %v656_v31 = vadd.f32 %v655_v10, %v649_v9 }
 0x557   : > { %658 = vst.msk [vmem:[#allocation8] sm:$0x1] %vm657_vm1, %v656_v31 }
 0x558   : > { %951 = dma.vmem_to_hbm [thread:$0]  (%p1244_p2), %s713_s29, 16, %s715_s16, [#allocation7]  }
 0x559   : > { %1134 = dma.done.wait (%p1244_p2), [#allocation7], 16  }
 0x55a   : > { %1136 = vsyncadd (%p1244_p2), [#allocation7], 4294967280 }
 0x55b PF: > { %p965_p4 = scmp.ge.s32.totalorder %s1167_s23, 2  ;;  %s731_s14 = sand.u32 1, %s1147_s18  }
 0x55c   : > { %s732_s9 = scalar_lea.sflag [#allocation5], %s731_s14 }
 0x55d   : > { %p957_p3 = pnand %p965_p4, %p1263_p8 }
 0x55f   : > { %p958_p5 = pneg %p957_p3 }
 0x561   : > { %1138 = dma.done.wait (%p958_p5), %s732_s9, 1024  }
 0x562   : > { %1140 = vsyncadd (%p958_p5), %s732_s9, 4294966272  ;;  %s1452_s10 = sadd.s32 4294967294, %s1167_s23  }
 0x563   : > { %s741_s0 = sand.u32 1, %s1452_s10  }
 0x564   : > { %s742_s8 = scalar_lea.sflag [#allocation7], %s741_s0 }
 0x565   : > { %1142 = dma.done.wait (%p958_p5), %s742_s8, 1024  }
 0x566   : > { %1144 = vsyncadd (%p958_p5), %s742_s8, 4294966272  ;;  %s22_s23 = sadd.s32 1, %s1167_s23   ;;  %s1453_s18 = smov %s1151_s19 }
 0x567   : > { %p19_p2 = scmp.ge.s32.totalorder %s22_s23, 4   ;;  %s1454_s19 = smov %s1155_s20 }
 0x568   : > { %s1455_s20 = smov %s1269_s7  ;;  %s1456_s21 = smov %s1163_s22 }
 0x569   : > { %s1457_s22 = smov %s1459_s26  ;;  %21 = sbr.rel (!%p19_p2) target bundleno = 10 (0xa), region = 118 }
 0x56e   :  { %748 = vsyncpa [#allocation5], 1 }
 0x56f   :  { %750 = vsyncpa [#allocation5 + $0x1], 1 }
 0x570   :  { %751 = vsyncpa [#allocation7], 1 }
 0x571   :  { %753 = vsyncpa [#allocation7 + $0x1], 1 }

</bundles_post_ra>
